<compile_context>
chip_gen: v5e
topology: v5e:2x2
jax: 0.10.0
libtpu: 0.0.40
codegen_flags: <defaults>
</compile_context>

<pallas_src>
import functools

import jax
import jax.numpy as jnp
from jax.experimental import pallas as pl
from jax.experimental.pallas import tpu as pltpu


def _temporal_shift_kernel(x_ref, o_ref, *, f1, f2, copy_tail):
    """Block shape (1, T, c_blk, hw_tile).

    Channel regions within the block:
      [0,  f1)  forward-shifted   (out[t] = x[t+1], last frame zero)
      [f1, f2)  backward-shifted  (out[t] = x[t-1], first frame zero)
      [f2, ...) untouched         (copied only when copy_tail=True; in the
                                   aliased fast path these channels are not
                                   even part of the block)
    """
    _, t, c_blk, hw_t = o_ref.shape

    if f1 > 0:
        if t > 1:
            o_ref[:, : t - 1, :f1, :] = x_ref[:, 1:, :f1, :]
            o_ref[:, t - 1:, :f1, :] = jnp.zeros((1, 1, f1, hw_t), o_ref.dtype)
        else:
            o_ref[:, :, :f1, :] = jnp.zeros((1, t, f1, hw_t), o_ref.dtype)

    if f2 > f1:
        if t > 1:
            o_ref[:, 1:, f1:f2, :] = x_ref[:, : t - 1, f1:f2, :]
            o_ref[:, :1, f1:f2, :] = jnp.zeros((1, 1, f2 - f1, hw_t), o_ref.dtype)
        else:
            o_ref[:, :, f1:f2, :] = jnp.zeros((1, t, f2 - f1, hw_t), o_ref.dtype)

    if copy_tail and f2 < c_blk:
        o_ref[:, :, f2:, :] = x_ref[:, :, f2:, :]


def _vmem_budget_bytes():
    """(target_block_bytes, vmem_limit_cap) chosen per TPU generation."""
    cap = None
    try:
        info = pltpu.get_tpu_info()
        cap = getattr(info, "vmem_capacity_bytes", None)
    except Exception:
        cap = None
    if cap is None:
        cap = 64 << 20  # conservative: assume v7x-like 64 MiB physical VMEM
    if cap >= (100 << 20):      # v5e / v6e: 128 MiB physical VMEM
        return 8 << 20, 64 << 20
    return 4 << 20, 40 << 20    # v7x: 64 MiB physical VMEM


def _pick_hw_tile(hw, bytes_per_lane_col, n_batch, target_block_bytes):
    """Pick a lane (HW) tile: multiple of 128, block <= target, grid >= 4 steps."""
    if hw < 128:
        # Lane dim must then equal the full array dim (Pallas (8,128) rule).
        # Blocks are tiny at these spatial sizes (e.g. 7x7), so this is fine.
        # TODO(synk): with hw < 128 and a very large C the untiled-HW block
        # could still exceed the v7x VMEM budget; tile the C axis in that case.
        return hw
    cap_cols = max(128, target_block_bytes // max(1, bytes_per_lane_col))
    cap_tile = max(128, (min(cap_cols, hw) // 128) * 128)
    n_tiles = pl.cdiv(hw, cap_tile)
    hw_tile = ((pl.cdiv(hw, n_tiles) + 127) // 128) * 128
    # v7x: both TensorCores only get work if there are enough "parallel" grid
    # steps; shrink the tile (still a multiple of 128) until >= 4 steps.
    while n_batch * pl.cdiv(hw, hw_tile) < 4 and hw_tile > 128:
        n_tiles = pl.cdiv(hw, hw_tile) + 1
        new_tile = ((pl.cdiv(hw, n_tiles) + 127) // 128) * 128
        if new_tile >= hw_tile:
            break
        hw_tile = new_tile
    return hw_tile


def temporal_shift_pallas(x_nchw, n_segment=3, fold_div=8, alias_input=True):
    """x_nchw: (nt, C, H, W) -> temporally shifted (nt, C, H, W)."""
    nt, c, h, w = x_nchw.shape
    assert nt % n_segment == 0, "nt must be divisible by n_segment"
    n_batch = nt // n_segment
    t = n_segment
    fold = c // fold_div            # PyTorch floor behavior for non-divisible C
    f1 = min(fold, c)               # forward-shifted region end
    f2 = min(2 * fold, c)           # backward-shifted region end
    hw = h * w
    dtype = x_nchw.dtype
    itemsize = jnp.dtype(dtype).itemsize

    if f1 == 0:
        # fold == 0: no channel shifts at all -> output == input.
        return x_nchw

    x5 = x_nchw.reshape(n_batch, t, c, hw)

    # Sublane packing multiple (f32: 8, bf16: 16, int8/fp8: 32).
    sublane = max(8, 32 // itemsize)
    target_block_bytes, vmem_cap = _vmem_budget_bytes()

    # Aliased fast path: in/out blocks only cover the shifted channel slab
    # [0, f2); untouched channels stay put because the output buffer IS the
    # input buffer.  Requires the C block (f2) to be sublane-aligned.
    use_alias = alias_input and (f2 % sublane == 0)
    c_blk = f2 if use_alias else c

    bytes_per_lane_col = t * c_blk * itemsize
    hw_tile = _pick_hw_tile(hw, bytes_per_lane_col, n_batch, target_block_bytes)
    n_hw_tiles = pl.cdiv(hw, hw_tile)

    block_bytes = t * c_blk * hw_tile * itemsize
    vmem_limit = int(min(max(6 * block_bytes, 16 << 20), vmem_cap))
    # Never clamp below what double-buffered in+out actually needs.
    vmem_limit = max(vmem_limit, 4 * block_bytes + (1 << 20))

    kernel = functools.partial(_temporal_shift_kernel, f1=f1, f2=f2,
                               copy_tail=not use_alias)
    idx_map = lambda b, j: (b, 0, 0, j)
    in_spec = pl.BlockSpec((1, t, c_blk, hw_tile), idx_map)
    out_spec = pl.BlockSpec((1, t, c_blk, hw_tile), idx_map)

    y5 = pl.pallas_call(
        kernel,
        out_shape=jax.ShapeDtypeStruct((n_batch, t, c, hw), dtype),
        grid_spec=pltpu.PrefetchScalarGridSpec(
            num_scalar_prefetch=0,
            grid=(n_batch, n_hw_tiles),
            in_specs=[in_spec],
            out_specs=out_spec,
        ),
        input_output_aliases=({0: 0} if use_alias else {}),
        compiler_params=pltpu.CompilerParams(
            dimension_semantics=("parallel", "parallel"),
            vmem_limit_bytes=vmem_limit,
        ),
    )(x5)

    return y5.reshape(nt, c, h, w)


def net_stub(out, sp_past, sp_now):
    # TODO(synk): `self.net` is an externally supplied module (ARC block); no
    # definition is available, so an identity stand-in on `out` is used here.
    del sp_past, sp_now
    return out


def temporal_shift_behind_arc_forward(out, sp_past, sp_now,
                                      n_segment=3, n_div=8):
    # Defaults of the original module: shuffle=False, groups=1, inplace=False,
    # args.shift_types=None -> plain out-of-place shift() path.
    x = net_stub(out, sp_past, sp_now)
    return temporal_shift_pallas(x, n_segment=n_segment, fold_div=n_div)


def _reference_shift(x_nchw, n_segment=3, fold_div=8):
    nt, c, h, w = x_nchw.shape
    n = nt // n_segment
    fold = c // fold_div
    x = x_nchw.reshape(n, n_segment, c, h, w)
    out = jnp.zeros_like(x)
    out = out.at[:, :-1, :fold].set(x[:, 1:, :fold])
    out = out.at[:, 1:, fold:2 * fold].set(x[:, :-1, fold:2 * fold])
    out = out.at[:, :, 2 * fold:].set(x[:, :, 2 * fold:])
    return out.reshape(nt, c, h, w)


if __name__ == "__main__":
    key = jax.random.PRNGKey(0)

    n_segment = 3
    n_div = 8
    n_batch = 2

    # Run through jit so the input_output_aliases donation is handled by XLA
    # (jit parameters are not donated; XLA inserts a copy where needed, while
    # in a real model the ARC output is an intermediate and aliases for free).
    fwd = jax.jit(functools.partial(temporal_shift_behind_arc_forward,
                                    n_segment=n_segment, n_div=n_div))

    # Case 1: C=64 (2*fold=16, sublane-aligned) and hw=256 (multiple of 128)
    #         -> exercises the aliased, shifted-channels-only fast path.
    # Case 2: C=16 (2*fold=4, NOT sublane-aligned) and hw=196 (not a multiple
    #         of 128) -> exercises the full-channel path with a ragged last
    #         HW tile.
    shapes = [(n_batch * n_segment, 64, 16, 16),
              (n_batch * n_segment, 16, 14, 14)]

    for shape in shapes:
        k1, k2, k3, key = jax.random.split(key, 4)
        out = jax.random.normal(k1, shape, dtype=jnp.float32)
        sp_past = jax.random.normal(k2, shape, dtype=jnp.float32)
        sp_now = jax.random.normal(k3, shape, dtype=jnp.float32)

        y = jax.block_until_ready(fwd(out, sp_past, sp_now))

        y_ref = _reference_shift(net_stub(out, sp_past, sp_now),
                                 n_segment=n_segment, fold_div=n_div)
        assert y.shape == shape
        assert jnp.allclose(y, y_ref), f"Pallas result mismatch vs reference for {shape}"

    print("KERNEL_OK")
</pallas_src>

<mosaic_0001>
module attributes {stable_mosaic.version = 11 : i64} {
  func.func @_temporal_shift_kernel(%arg0: i32, %arg1: i32, %arg2: memref<1x3x16x128xf32, #tpu.memory_space<vmem>>, %arg3: memref<1x3x16x128xf32, #tpu.memory_space<vmem>>) attributes {dimension_semantics = [#tpu.dimension_semantics<parallel>, #tpu.dimension_semantics<parallel>], iteration_bounds = array<i64: 2, 2>, scalar_prefetch = 0 : i64, scratch_operands = 0 : i64, tpu.core_type = #tpu.core_type<tc>, window_params = [{transform_indices = @transform_0, window_bounds = array<i64: 1, 3, 16, 128>}, {transform_indices = @transform_1, window_bounds = array<i64: 1, 3, 16, 128>}]} {
    %c0 = arith.constant 0 : index
    %c1 = arith.constant 1 : index
    %c0_0 = arith.constant 0 : index
    %c0_1 = arith.constant 0 : index
    %0 = vector.load %arg2[%c0, %c1, %c0_0, %c0_1] : memref<1x3x16x128xf32, #tpu.memory_space<vmem>>, vector<1x2x8x128xf32>
    %c0_2 = arith.constant 0 : index
    %c0_3 = arith.constant 0 : index
    %c0_4 = arith.constant 0 : index
    %c0_5 = arith.constant 0 : index
    %1 = vector.load %arg3[%c0_2, %c0_3, %c0_4, %c0_5] : memref<1x3x16x128xf32, #tpu.memory_space<vmem>>, vector<1x2x8x128xf32>
    tpu.vector_store %arg3[%c0_2, %c0_3, %c0_4, %c0_5], %0 {strides = array<i32>} : memref<1x3x16x128xf32, #tpu.memory_space<vmem>>, vector<1x2x8x128xf32>,
    %cst = arith.constant 0.000000e+00 : f32
    %2 = vector.broadcast %cst : f32 to vector<1x1x8x128xf32>
    %c0_6 = arith.constant 0 : index
    %c2 = arith.constant 2 : index
    %c0_7 = arith.constant 0 : index
    %c0_8 = arith.constant 0 : index
    %3 = vector.load %arg3[%c0_6, %c2, %c0_7, %c0_8] : memref<1x3x16x128xf32, #tpu.memory_space<vmem>>, vector<1x1x8x128xf32>
    tpu.vector_store %arg3[%c0_6, %c2, %c0_7, %c0_8], %2 {strides = array<i32>} : memref<1x3x16x128xf32, #tpu.memory_space<vmem>>, vector<1x1x8x128xf32>,
    %c0_9 = arith.constant 0 : index
    %c0_10 = arith.constant 0 : index
    %c8 = arith.constant 8 : index
    %c0_11 = arith.constant 0 : index
    %4 = vector.load %arg2[%c0_9, %c0_10, %c8, %c0_11] : memref<1x3x16x128xf32, #tpu.memory_space<vmem>>, vector<1x2x8x128xf32>
    %c0_12 = arith.constant 0 : index
    %c1_13 = arith.constant 1 : index
    %c8_14 = arith.constant 8 : index
    %c0_15 = arith.constant 0 : index
    %5 = vector.load %arg3[%c0_12, %c1_13, %c8_14, %c0_15] : memref<1x3x16x128xf32, #tpu.memory_space<vmem>>, vector<1x2x8x128xf32>
    tpu.vector_store %arg3[%c0_12, %c1_13, %c8_14, %c0_15], %4 {strides = array<i32>} : memref<1x3x16x128xf32, #tpu.memory_space<vmem>>, vector<1x2x8x128xf32>,
    %cst_16 = arith.constant 0.000000e+00 : f32
    %6 = vector.broadcast %cst_16 : f32 to vector<1x1x8x128xf32>
    %c0_17 = arith.constant 0 : index
    %c0_18 = arith.constant 0 : index
    %c8_19 = arith.constant 8 : index
    %c0_20 = arith.constant 0 : index
    %7 = vector.load %arg3[%c0_17, %c0_18, %c8_19, %c0_20] : memref<1x3x16x128xf32, #tpu.memory_space<vmem>>, vector<1x1x8x128xf32>
    tpu.vector_store %arg3[%c0_17, %c0_18, %c8_19, %c0_20], %6 {strides = array<i32>} : memref<1x3x16x128xf32, #tpu.memory_space<vmem>>, vector<1x1x8x128xf32>,
    return
  }
  func.func @transform_0(%arg0: i32, %arg1: i32) -> (i32, i32, i32, i32) {
    %c0_i32 = arith.constant 0 : i32
    %c0_i32_0 = arith.constant 0 : i32
    %c0_i32_1 = arith.constant 0 : i32
    return %arg0, %c0_i32, %c0_i32_0, %arg1 : i32, i32, i32, i32
  }
  func.func @transform_1(%arg0: i32, %arg1: i32) -> (i32, i32, i32, i32) {
    %c0_i32 = arith.constant 0 : i32
    %c0_i32_0 = arith.constant 0 : i32
    %c0_i32_1 = arith.constant 0 : i32
    return %arg0, %c0_i32, %c0_i32_0, %arg1 : i32, i32, i32, i32
  }
}

</mosaic_0001>

<bundles_post_ra>
// kernel: temporal_shift_behind_arc_forward.1
= control target key start
LH: loop header
LB: loop body
LE: loop exit
PB: predicated region body
PF: predicated region fallthrough
CT: control target
= control target key end

     0   :  { %s475_s6 = smov 0   ;;  %s477_s7 = smov 0   ;;  %s571_s0 = inlined_call_operand.vmem [shape: f32[2,3,64,256], index: 0, kind: input, shape index: {}, may-alias: {0,1}]   ;;  %s572_s1 = inlined_call_operand.vmem [shape: f32[2,3,64,256], index: 1, kind: output, shape index: {}, may-alias: {0,1}]  }
   0x1   :  { %s479_s8 = smov 0   ;;  %s481_s9 = smov 0  }
   0x2   :  { %s483_s10 = smov 0   ;;  %s485_s11 = smov 0  }
   0x3   :  { %s487_s12 = smov 0  }
   0x4 LB: > { %s20_s13 = sadd.s32 1, %s454_s10  ;;  %s23_s14 = sadd.s32 1, %s458_s11  ;;  %s462_s12 = sphi %s487_s12, %s11_s12   ;;  %s458_s11 = sphi %s485_s11, %s579_s11   ;;  %s454_s10 = sphi %s483_s10, %s578_s10   ;;  %s450_s9 = sphi %s481_s9, %s577_s9   ;;  %s446_s8 = sphi %s479_s8, %s576_s8   ;;  %s442_s7 = sphi %s477_s7, %s575_s7   ;;  %s438_s6 = sphi %s475_s6, %s574_s6  }
   0x5   : > { %p21_p0 = scmp.ge.s32.totalorder %s20_s13, 2  ;;  %s333_s15 = sadd.s32 4294967295, %s462_s12  }
   0x6   : > { %p39_p1 = scmp.ne.s32.totalorder %s442_s7, %s438_s6  ;;  %p40_p2 = scmp.eq.s32.totalorder %s462_s12, 0 }
   0x7   : > { %s581_s13 = smov (%p21_p0, %s20_s13), 0  ;;  %s583_s14 = smov (!%p21_p0, %s23_s14), %s458_s11 }
   0x8   : > { %p25_p3 = scmp.ge.s32.totalorder %s583_s14, 2  ;;  %p71_p4 = scmp.eq.s32.totalorder %s333_s15, 3 }
   0x9   : > { %s28_s16 = ssub.s32 %s454_s10, %s581_s13  ;;  %p41_p5 = por %p40_p2, %p39_p1 }
   0xa   : > { %s585_s14 = smov (%p25_p3, %s583_s14), 0  ;;  %p523_p6 = por %p71_p4, %p39_p1 }
   0xb   : > { %s27_s18 = ssub.s32 %s458_s11, %s585_s14  ;;  %s32_s20 = sadd.s32 1, %s442_s7 }
   0xc   : > { %s29_s19 = sor.u32 %s28_s16, %s27_s18  ;;  %p336_p8 = scmp.ge.s32.totalorder %s462_s12, 4 }
   0xd   : > { %p30_p7 = scmp.eq.s32.totalorder %s29_s19, 0 }
   0xe   : > { %93 = sbr.rel (%p336_p8) target bundleno = 32 (0x20), region = 16 }
   0xf   : > { %s531_s21 = scalar_select %p30_p7, %s442_s7, %s32_s20  }
  0x13   : > { %96 = sbr.rel (!%p41_p5) target bundleno = 32 (0x20), region = 20  ;;  %s98_s22 = sand.u32 (%p41_p5), 1, %s442_s7  }
  0x14   : > { %s348_s23 = smul.u32 (%p41_p5), 48, %s458_s11 }
  0x15   : > { %s347_s24 = smul.u32 (%p41_p5), 48, %s98_s22 }
  0x16   : > { %s102_s25 = sadd.s32 (%p41_p5), %s454_s10, %s348_s23 }
  0x17   : > { %s337_s26 = sshll.u32 (%p41_p5), %s102_s25, 3  ;;  %s100_s30 = scalar_lea.vmem (%p41_p5), [#allocation2], %s347_s24 }
  0x18   : > { %s104_s29 = scalar_lea.vmem %s571_s0, %s337_s26 }
  0x19   : > { %v143_v0 = vld [vmem:[%s104_s29] sm:$0xff]  ;;  %v145_v1 = vld [vmem:[%s104_s29 + $0x10] sm:$0xff] }
  0x1a   : > { %v147_v2 = vld [vmem:[%s104_s29 + $0x80] sm:$0xff]  ;;  %144 = vst [vmem:[%s100_s30] sm:$0xff] %v143_v0  ;;  %v149_v3 = vld [vmem:[%s104_s29 + $0x90] sm:$0xff] }
  0x1b   : > { %146 = vst [vmem:[%s100_s30 + $0x8] sm:$0xff] %v145_v1  ;;  %v151_v4 = vld [vmem:[%s104_s29 + $0x100] sm:$0xff]  ;;  %v153_v5 = vld [vmem:[%s104_s29 + $0x110] sm:$0xff] }
  0x1c   : > { %148 = vst [vmem:[%s100_s30 + $0x10] sm:$0xff] %v147_v2 }
  0x1d   : > { %150 = vst [vmem:[%s100_s30 + $0x18] sm:$0xff] %v149_v3 }
  0x1e   : > { %152 = vst [vmem:[%s100_s30 + $0x20] sm:$0xff] %v151_v4 }
  0x1f   : > { %154 = vst [vmem:[%s100_s30 + $0x28] sm:$0xff] %v153_v5 }
  0x20 PF: > { %p338_p9 = scmp.ge.s32.totalorder %s462_s12, 1  ;;  %p159_p10 = scmp.lt.s32.totalorder %s462_s12, 5 }
  0x22   : > { %p160_p11 = pnand %p338_p9, %p159_p10 }
  0x23   : > { %s166_s2 = sand.u32 (!%p160_p11), 1, %s438_s6  }
  0x24   : > { %163 = sbr.rel (%p160_p11) target bundleno = 56 (0x38), region = 58 }
  0x25   : > { %s349_s3 = smul.u32 (!%p160_p11), 48, %s166_s2 }
  0x27   : > { %s168_s4 = scalar_lea.vmem (!%p160_p11), [#allocation2], %s349_s3  ;;  %s183_s5 = scalar_lea.vmem (!%p160_p11), [#allocation3], %s349_s3 }
  0x29   : > { %v339_v6 = vld [vmem:[%s168_s4 + $0x10] sm:$0xff]  ;;  %v340_v7 = vld [vmem:[%s168_s4 + $0x20] sm:$0xff]  ;;  %v464_v8 = vmov 0.0   ;;  %v191_v9 = vld [vmem:[%s168_s4 + $0x8] sm:$0xff]  ;;  %s350_s6 = smul.u32 (%p523_p6), 48, %s450_s9 }
  0x2a   : > { %341 = vst [vmem:[%s183_s5 + $0x20] sm:$0xff] %v464_v8  ;;  %v192_v10 = vld [vmem:[%s168_s4 + $0x18] sm:$0xff] }
  0x2b   : > { %187 = vst [vmem:[%s183_s5] sm:$0xff] %v339_v6  ;;  %203 = sbr.rel (!%p523_p6) target bundleno = 56 (0x38), region = 66  ;;  %s205_s15 = sadd.s32 (%p523_p6), %s446_s8, %s350_s6 }
  0x2c   : > { %188 = vst [vmem:[%s183_s5 + $0x10] sm:$0xff] %v340_v7  ;;  %s344_s16 = sshll.u32 (%p523_p6), %s205_s15, 3 }
  0x2d   : > { %196 = vst [vmem:[%s183_s5 + $0x8] sm:$0xff] %v464_v8  ;;  %s207_s20 = scalar_lea.vmem (%p523_p6), %s572_s1, %s344_s16 }
  0x2e   : > { %342 = vst [vmem:[%s183_s5 + $0x18] sm:$0xff] %v191_v9 }
  0x2f   : > { %343 = vst [vmem:[%s183_s5 + $0x28] sm:$0xff] %v192_v10 }
  0x31   : > { %v254_v15 = vld [vmem:[%s183_s5 + $0x20] sm:$0xff] }
  0x32   : > { %v246_v11 = vld [vmem:[%s183_s5] sm:$0xff]  ;;  %255 = vst [vmem:[%s207_s20 + $0x100] sm:$0xff] %v254_v15 }
  0x33   : > { %v250_v13 = vld [vmem:[%s183_s5 + $0x10] sm:$0xff]  ;;  %247 = vst [vmem:[%s207_s20] sm:$0xff] %v246_v11 }
  0x34   : > { %v248_v12 = vld [vmem:[%s183_s5 + $0x8] sm:$0xff]  ;;  %251 = vst [vmem:[%s207_s20 + $0x80] sm:$0xff] %v250_v13 }
  0x35   : > { %v252_v14 = vld [vmem:[%s183_s5 + $0x18] sm:$0xff]  ;;  %249 = vst [vmem:[%s207_s20 + $0x10] sm:$0xff] %v248_v12 }
  0x36   : > { %v256_v16 = vld [vmem:[%s183_s5 + $0x28] sm:$0xff]  ;;  %253 = vst [vmem:[%s207_s20 + $0x90] sm:$0xff] %v252_v14 }
  0x37   : > { %257 = vst [vmem:[%s207_s20 + $0x110] sm:$0xff] %v256_v16 }
  0x38 PF: > { %s11_s12 = sadd.s32 1, %s462_s12   ;;  %s574_s6 = smov %s442_s7 }
  0x39   : > { %p8_p12 = scmp.ge.s32.totalorder %s11_s12, 6   ;;  %s575_s7 = smov %s531_s21 }
  0x3a   : > { %s576_s8 = smov %s454_s10  ;;  %s577_s9 = smov %s458_s11 }
  0x3b   : > { %s578_s10 = smov %s581_s13  ;;  %s579_s11 = smov %s585_s14 }
  0x3c   :  { %10 = sbr.rel (!%p8_p12) target bundleno = 4 (0x4), region = 138 }

</bundles_post_ra>
